<compile_context>
chip_gen: v7x
topology: tpu7x:2x2x1
jax: 0.10.0
libtpu: 0.0.40
codegen_flags: <defaults>
</compile_context>

<pallas_src>
import functools

import jax
import jax.numpy as jnp
from jax import lax
from jax.experimental import pallas as pl
from jax.experimental.pallas import tpu as pltpu


def _conv2x2_sum_kernel(w_ref, x_ref, o_ref, *, H, W):
    # w_ref: SMEM (4,) f32, scalar-prefetched conv weight [w00, w01, w10, w11]
    # x_ref: VMEM (TB, H*W) f32, TB flattened images (lane-dense last dim)
    # o_ref: SMEM (num_blocks,) f32, per-block partial sums (resident)
    i = pl.program_id(0)
    x = x_ref[...]                                   # (TB, H*W)
    HW = H * W

    w00 = w_ref[0]
    w01 = w_ref[1]
    w10 = w_ref[2]
    w11 = w_ref[3]
    wsum = w00 + w01 + w10 + w11

    # Bulk reduce: one lane-dense pass over the whole block (HBM-bound part).
    total = jnp.sum(x)

    # Row borders: contiguous lane slices of the flat [H*W] view.
    row0 = jnp.sum(x[:, :W])                         # first row of each image
    rowL = jnp.sum(x[:, (H - 1) * W:])               # last row of each image

    # Column borders: masked lane-dense sums (no strided / shifted slices).
    lane = lax.broadcasted_iota(jnp.int32, x.shape, 1)
    if W & (W - 1) == 0:
        wpos = lane & (W - 1)                        # W is a power of two
    else:
        wpos = lane % W
    zero = jnp.zeros_like(x)
    col0 = jnp.sum(jnp.where(wpos == 0, x, zero))    # first column
    colL = jnp.sum(jnp.where(wpos == W - 1, x, zero))  # last column

    # Corners (single flat elements per image, summed over the block).
    c00 = jnp.sum(x[:, 0:1])                              # x[0,   0  ]
    c0L = jnp.sum(x[:, W - 1:W])                          # x[0,   W-1]
    cL0 = jnp.sum(x[:, (H - 1) * W:(H - 1) * W + 1])      # x[H-1, 0  ]
    cLL = jnp.sum(x[:, HW - 1:HW])                        # x[H-1, W-1]

    # Inclusion-exclusion combination of the four sub-rectangle sums.
    partial = (wsum * total
               - (w00 + w01) * rowL - (w10 + w11) * row0
               - (w00 + w10) * colL - (w01 + w11) * col0
               + w00 * cLL + w01 * cL0 + w10 * c0L + w11 * c00)

    o_ref[i] = partial


def net_forward(x, w, *, target_block_bytes=4 * 1024 * 1024):
    """x: [N, 1, H, W] f32, w: [1, 1, 2, 2] f32 (no bias).

    Returns scalar f32 = Conv2d(1,1,2,bias=False)(x).sum().
    """
    N, C, H, W = x.shape
    assert C == 1, "Net uses Conv2d(1, 1, 2): single input channel"
    assert H >= 2 and W >= 2, "2x2 valid conv needs H,W >= 2"
    HW = H * W

    # Lane-dense flat view: one image per row, last dim H*W.
    x2 = x.reshape(N, HW).astype(jnp.float32)
    w_flat = w.reshape(4).astype(jnp.float32)

    # Block sizing: many images per grid step, ~4 MiB per block so the
    # double-buffered footprint fits every generation's default scoped VMEM
    # (v5e 16 MiB, v6e/v7x 32 MiB).
    bytes_per_img = HW * 4
    if N * bytes_per_img <= target_block_bytes:
        TB = N                                   # single grid step, no padding
    else:
        TB = max(8, (target_block_bytes // bytes_per_img) // 8 * 8)
    n_blocks = pl.cdiv(N, TB)
    n_pad = n_blocks * TB
    if n_pad != N:
        # Zero-padded images contribute exactly 0 to every aggregate above.
        x2 = jnp.pad(x2, ((0, n_pad - N), (0, 0)))

    kernel = functools.partial(_conv2x2_sum_kernel, H=H, W=W)

    partials = pl.pallas_call(
        kernel,
        out_shape=jax.ShapeDtypeStruct((n_blocks,), jnp.float32),
        grid_spec=pltpu.PrefetchScalarGridSpec(
            num_scalar_prefetch=1,               # conv weights -> SMEM
            grid=(n_blocks,),
            in_specs=[
                pl.BlockSpec((TB, HW), lambda i, w_s: (i, 0)),   # image block
            ],
            out_specs=pl.BlockSpec(memory_space=pltpu.MemorySpace.SMEM),
        ),
        compiler_params=pltpu.CompilerParams(
            # Per-block partials: no cross-step accumulator dependency.  Kept
            # "arbitrary" because the unblocked SMEM output stays resident
            # across the grid.
            # TODO(synk): for v7x megacore with large N, block the output per
            # grid step and mark this axis "parallel" to shard across both TCs.
            dimension_semantics=("arbitrary",)),
    )(w_flat, x2)

    return jnp.sum(partials)


if __name__ == "__main__":
    key = jax.random.PRNGKey(0)
    kx, kw = jax.random.split(key)

    # Deterministic synthetic parameters / inputs (no checkpoint load).
    N, C, H, W = 2, 1, 16, 16
    x = jax.random.normal(kx, (N, C, H, W), dtype=jnp.float32)
    w = jax.random.normal(kw, (1, 1, 2, 2), dtype=jnp.float32) * 0.5

    out = net_forward(x, w)
    out = jax.block_until_ready(out)

    # Pure-JAX reference for the forward-pass semantics.
    ref = jnp.sum(jax.lax.conv_general_dilated(
        x, w, window_strides=(1, 1), padding="VALID",
        dimension_numbers=("NCHW", "OIHW", "NCHW")))
    assert jnp.allclose(out, ref, rtol=1e-4, atol=1e-4), (out, ref)

    print("KERNEL_OK")
</pallas_src>

<mosaic_0001>
module attributes {stable_mosaic.version = 11 : i64} {
  func.func @_conv2x2_sum_kernel(%arg0: i32, %arg1: memref<4xf32, #tpu.memory_space<smem>>, %arg2: memref<2x256xf32, #tpu.memory_space<vmem>>, %arg3: memref<1xf32, #tpu.memory_space<smem>>) attributes {dimension_semantics = [#tpu.dimension_semantics<arbitrary>], iteration_bounds = array<i64: 1>, scalar_prefetch = 1 : i64, scratch_operands = 0 : i64, tpu.core_type = #tpu.core_type<tc>, window_params = [{transform_indices = @transform_0, window_bounds = array<i64: 2, 256>}, {transform_indices = @transform_1, window_bounds = array<i64: 1>}]} {
    %c0 = arith.constant 0 : index
    %c0_0 = arith.constant 0 : index
    %0 = vector.load %arg2[%c0, %c0_0] : memref<2x256xf32, #tpu.memory_space<vmem>>, vector<2x256xf32>
    %c0_1 = arith.constant 0 : index
    %1 = memref.load %arg1[%c0_1] : memref<4xf32, #tpu.memory_space<smem>>
    %c1 = arith.constant 1 : index
    %2 = memref.load %arg1[%c1] : memref<4xf32, #tpu.memory_space<smem>>
    %c2 = arith.constant 2 : index
    %3 = memref.load %arg1[%c2] : memref<4xf32, #tpu.memory_space<smem>>
    %c3 = arith.constant 3 : index
    %4 = memref.load %arg1[%c3] : memref<4xf32, #tpu.memory_space<smem>>
    %5 = arith.addf %1, %2 : f32
    %6 = arith.addf %5, %3 : f32
    %7 = arith.addf %6, %4 : f32
    %8 = vector.shape_cast %0 : vector<2x256xf32> to vector<1x2x256xf32>
    %cst = arith.constant dense<0.000000e+00> : vector<1xf32>
    %9 = vector.multi_reduction <add>, %8, %cst [1, 2] : vector<1x2x256xf32> to vector<1xf32>
    %10 = vector.shape_cast %9 : vector<1xf32> to vector<1x1x1xf32>
    %11 = vector.extract %10[0, 0, 0] : f32 from vector<1x1x1xf32>
    %12 = vector.extract_strided_slice %0 {offsets = [0, 0], sizes = [2, 16], strides = [1, 1]} : vector<2x256xf32> to vector<2x16xf32>
    %13 = vector.shape_cast %12 : vector<2x16xf32> to vector<1x2x16xf32>
    %cst_2 = arith.constant dense<0.000000e+00> : vector<1xf32>
    %14 = vector.multi_reduction <add>, %13, %cst_2 [1, 2] : vector<1x2x16xf32> to vector<1xf32>
    %15 = vector.shape_cast %14 : vector<1xf32> to vector<1x1x1xf32>
    %16 = vector.extract %15[0, 0, 0] : f32 from vector<1x1x1xf32>
    %17 = vector.extract_strided_slice %0 {offsets = [0, 240], sizes = [2, 16], strides = [1, 1]} : vector<2x256xf32> to vector<2x16xf32>
    %18 = vector.shape_cast %17 : vector<2x16xf32> to vector<1x2x16xf32>
    %cst_3 = arith.constant dense<0.000000e+00> : vector<1xf32>
    %19 = vector.multi_reduction <add>, %18, %cst_3 [1, 2] : vector<1x2x16xf32> to vector<1xf32>
    %20 = vector.shape_cast %19 : vector<1xf32> to vector<1x1x1xf32>
    %21 = vector.extract %20[0, 0, 0] : f32 from vector<1x1x1xf32>
    %22 = tpu.iota {dimensions = array<i32: 1>} : vector<2x256xi32>
    %c15_i32 = arith.constant 15 : i32
    %23 = vector.broadcast %c15_i32 : i32 to vector<2x256xi32>
    %24 = arith.andi %22, %23 : vector<2x256xi32>
    %cst_4 = arith.constant 0.000000e+00 : f32
    %25 = vector.broadcast %cst_4 : f32 to vector<2x256xf32>
    %c0_i32 = arith.constant 0 : i32
    %26 = vector.broadcast %c0_i32 : i32 to vector<2x256xi32>
    %27 = arith.cmpi eq, %24, %26 : vector<2x256xi32>
    %28 = arith.select %27, %0, %25 : vector<2x256xi1>, vector<2x256xf32>
    %29 = vector.shape_cast %28 : vector<2x256xf32> to vector<1x2x256xf32>
    %cst_5 = arith.constant dense<0.000000e+00> : vector<1xf32>
    %30 = vector.multi_reduction <add>, %29, %cst_5 [1, 2] : vector<1x2x256xf32> to vector<1xf32>
    %31 = vector.shape_cast %30 : vector<1xf32> to vector<1x1x1xf32>
    %32 = vector.extract %31[0, 0, 0] : f32 from vector<1x1x1xf32>
    %c15_i32_6 = arith.constant 15 : i32
    %33 = vector.broadcast %c15_i32_6 : i32 to vector<2x256xi32>
    %34 = arith.cmpi eq, %24, %33 : vector<2x256xi32>
    %35 = arith.select %34, %0, %25 : vector<2x256xi1>, vector<2x256xf32>
    %36 = vector.shape_cast %35 : vector<2x256xf32> to vector<1x2x256xf32>
    %cst_7 = arith.constant dense<0.000000e+00> : vector<1xf32>
    %37 = vector.multi_reduction <add>, %36, %cst_7 [1, 2] : vector<1x2x256xf32> to vector<1xf32>
    %38 = vector.shape_cast %37 : vector<1xf32> to vector<1x1x1xf32>
    %39 = vector.extract %38[0, 0, 0] : f32 from vector<1x1x1xf32>
    %40 = vector.extract_strided_slice %0 {offsets = [0, 0], sizes = [2, 1], strides = [1, 1]} : vector<2x256xf32> to vector<2x1xf32>
    %41 = vector.shape_cast %40 : vector<2x1xf32> to vector<1x2x1xf32>
    %cst_8 = arith.constant dense<0.000000e+00> : vector<1xf32>
    %42 = vector.multi_reduction <add>, %41, %cst_8 [1, 2] : vector<1x2x1xf32> to vector<1xf32>
    %43 = vector.shape_cast %42 : vector<1xf32> to vector<1x1x1xf32>
    %44 = vector.extract %43[0, 0, 0] : f32 from vector<1x1x1xf32>
    %45 = vector.extract_strided_slice %0 {offsets = [0, 15], sizes = [2, 1], strides = [1, 1]} : vector<2x256xf32> to vector<2x1xf32>
    %46 = vector.shape_cast %45 : vector<2x1xf32> to vector<1x2x1xf32>
    %cst_9 = arith.constant dense<0.000000e+00> : vector<1xf32>
    %47 = vector.multi_reduction <add>, %46, %cst_9 [1, 2] : vector<1x2x1xf32> to vector<1xf32>
    %48 = vector.shape_cast %47 : vector<1xf32> to vector<1x1x1xf32>
    %49 = vector.extract %48[0, 0, 0] : f32 from vector<1x1x1xf32>
    %50 = vector.extract_strided_slice %0 {offsets = [0, 240], sizes = [2, 1], strides = [1, 1]} : vector<2x256xf32> to vector<2x1xf32>
    %51 = vector.shape_cast %50 : vector<2x1xf32> to vector<1x2x1xf32>
    %cst_10 = arith.constant dense<0.000000e+00> : vector<1xf32>
    %52 = vector.multi_reduction <add>, %51, %cst_10 [1, 2] : vector<1x2x1xf32> to vector<1xf32>
    %53 = vector.shape_cast %52 : vector<1xf32> to vector<1x1x1xf32>
    %54 = vector.extract %53[0, 0, 0] : f32 from vector<1x1x1xf32>
    %55 = vector.extract_strided_slice %0 {offsets = [0, 255], sizes = [2, 1], strides = [1, 1]} : vector<2x256xf32> to vector<2x1xf32>
    %56 = vector.shape_cast %55 : vector<2x1xf32> to vector<1x2x1xf32>
    %cst_11 = arith.constant dense<0.000000e+00> : vector<1xf32>
    %57 = vector.multi_reduction <add>, %56, %cst_11 [1, 2] : vector<1x2x1xf32> to vector<1xf32>
    %58 = vector.shape_cast %57 : vector<1xf32> to vector<1x1x1xf32>
    %59 = vector.extract %58[0, 0, 0] : f32 from vector<1x1x1xf32>
    %60 = arith.mulf %7, %11 : f32
    %61 = arith.addf %1, %2 : f32
    %62 = arith.mulf %61, %21 : f32
    %63 = arith.subf %60, %62 : f32
    %64 = arith.addf %3, %4 : f32
    %65 = arith.mulf %64, %16 : f32
    %66 = arith.subf %63, %65 : f32
    %67 = arith.addf %1, %3 : f32
    %68 = arith.mulf %67, %39 : f32
    %69 = arith.subf %66, %68 : f32
    %70 = arith.addf %2, %4 : f32
    %71 = arith.mulf %70, %32 : f32
    %72 = arith.subf %69, %71 : f32
    %73 = arith.mulf %1, %59 : f32
    %74 = arith.addf %72, %73 : f32
    %75 = arith.mulf %2, %54 : f32
    %76 = arith.addf %74, %75 : f32
    %77 = arith.mulf %3, %49 : f32
    %78 = arith.addf %76, %77 : f32
    %79 = arith.mulf %4, %44 : f32
    %80 = arith.addf %78, %79 : f32
    %81 = arith.index_cast %arg0 : i32 to index
    %82 = memref.load %arg3[%81] : memref<1xf32, #tpu.memory_space<smem>>
    memref.store %80, %arg3[%81] : memref<1xf32, #tpu.memory_space<smem>>
    return
  }
  func.func @transform_0(%arg0: i32, %arg1: memref<4xf32, #tpu.memory_space<smem>>) -> (i32, i32) {
    %c0_i32 = arith.constant 0 : i32
    %c0_i32_0 = arith.constant 0 : i32
    return %arg0, %c0_i32 : i32, i32
  }
  func.func @transform_1(%arg0: i32, %arg1: memref<4xf32, #tpu.memory_space<smem>>) -> i32 {
    %c0_i32 = arith.constant 0 : i32
    %c0_i32_0 = arith.constant 0 : i32
    return %c0_i32 : i32
  }
}

</mosaic_0001>

<bundles_post_ra>
// kernel: tpu_custom_call.1
= control target key start
LH: loop header
LB: loop body
LE: loop exit
PB: predicated region body
PF: predicated region fallthrough
CT: control target
= control target key end

     0   :  { %s368_s0 = inlined_call_operand.hbm [shape: f32[4], index: 0, kind: input, shape index: {}]   ;;  %s369_s1 = inlined_call_operand.hbm [shape: f32[2,256], index: 1, kind: input, shape index: {}]   ;;  %s370_s2 = inlined_call_operand.hbm [shape: f32[1], index: 2, kind: output, shape index: {}]  }
   0x1   :  { %s232_s11 = scalar_lea.hbm %s368_s0, 16 }
   0x2   :  { %p233_p0 = scmp.ne.s32.totalorder %s368_s0, %s232_s11  ;;  %p236_p1 = scmp.lt.u32.totalorder %s232_s11, %s368_s0 }
   0x4   :  { %p238_p2 = pnand %p236_p1, %p233_p0 }
   0x6   :  { %241 = shalt.err (!%p238_p2)  }
   0x7   :  { %s280_s16 = smov [#allocation3]  }
   0x8   :  { %8 = dma.hbm_to_smem %s368_s0, 16, %s280_s16, [#allocation2] }
   0x9   :  { %274 = dma.done.wait [#allocation2], 16 }
   0xa   :  { %275 = vsyncadd [#allocation2], 4294967280 }
   0xb   :  { %10 = sfence }
   0xc   :  { %11 = vsyncpa [#allocation5], 0 }
   0xd   :  { %12 = vsyncpa [#allocation6], 0  ;;  %s281_s19 = smov [#allocation4]   ;;  %s242_s23 = scalar_lea.hbm %s369_s1, 64 }
   0xe   :  { %s19_s20 = sshll.u32 %s281_s19, 4  ;;  %p243_p3 = scmp.ne.s32.totalorder %s369_s1, %s242_s23  ;;  %s20_s20 = int_to_ptr.vmem [resolvable:$true] %s19_s20 }
   0xf   :  { %p246_p4 = scmp.lt.u32.totalorder %s242_s23, %s369_s1 }
  0x11   :  { %p248_p5 = pnand %p246_p4, %p243_p3 }
  0x13   :  { %251 = shalt.err (!%p248_p5)
}
  0x14   :  { %s252_s0 = scalar_lea.vmem %s20_s20, 64  ;;  %p257_p7 = scmp.lt.s32.totalorder %s20_s20, %s20_s20 }
  0x15   :  { %p253_p6 = scmp.ne.s32.totalorder %s20_s20, %s252_s0  ;;  %p258_p8 = scmp.lt.s32.totalorder %s252_s0, %s252_s0 }
  0x17   :  { %p259_p9 = por %p258_p8, %p257_p7 }
  0x19   :  { %p260_p10 = pnand %p259_p9, %p253_p6 }
  0x1b   :  { %263 = shalt.err (!%p260_p10)
}
  0x1c   :  { %22 = dma.hbm_to_vmem [thread:$0]  %s369_s1, 64, %s20_s20, [#allocation5]  }
  0x1d   :  { %276 = dma.done.wait [#allocation5], 64  }
  0x1e   :  { %277 = vsyncadd [#allocation5], 4294967232  ;;  %v38_v0 = vlaneseq  ;;  %v282_v1 = vmov 1983009808   ;;  %v26_v6 = vld [vmem:[#allocation4] sm:$0xf] }
  0x1f   :  { %v36_v2 = vunpack.c.l.s4 %v282_v1  ;;  %s283_s30 = smov 16   ;;  %s284_s3 = smov 113   ;;  %vm58_vm2 = vcmask 123904   ;;  %vm45_vm3 = vcmask 1041408   ;;  %vm120_vm6 = vcmask 1024  }
  0x20   :  { %v39_v3 = vshrl.u32 %v38_v0, 7  ;;  %69 = vrot.lane.b32.xlu0 %v26_v6, %s283_s30  ;;  %s285_s4 = smov 1   ;;  %v84_v8 = vand.u32 127, %v38_v0  ;;  %v59_v15 = vsel %vm58_vm2, %v26_v6, 0.0  ;;  %v121_v27 = vsel %vm120_vm6, %v26_v6, 0.0  ;;  %s334_s1 = sld [smem:[#allocation3]] }
  0x21   :  { %v37_v4 = vunpack.c.0.s8 %v36_v2  ;;  %s336_s5 = sld [smem:[#allocation3 + $0x1]]  ;;  %s338_s6 = sld [smem:[#allocation3 + $0x2]] }
  0x22   :  { %v85_v9 = vadd.s32 128, %v84_v8  ;;  %v86_v10 = vand.u32 15, %v84_v8  ;;  %s342_s8 = sld [smem:[#allocation3 + $0x3]] }
  0x23   :  { %v40_v5 = vsub.s32 %v37_v4, %v39_v3 }
  0x24   :  { %154 = vrot.lane.b32.xlu0 %v26_v6, %s285_s4  ;;  %v87_v11 = vand.u32 15, %v85_v9  ;;  %vm104_vm0 = vcmp.eq.s32.totalorder %v86_v10, 15  ;;  %vm88_vm4 = vcmp.eq.s32.totalorder %v86_v10, 0 }
  0x25   :  { %v41_v7 = vrot.slane %v26_v6, %v40_v5 }
  0x26   :  { %vm105_vm1 = vcmp.eq.s32.totalorder %v87_v11, 15  ;;  %vm89_vm5 = vcmp.eq.s32.totalorder %v87_v11, 0 }
  0x27   :  { %131 = vrot.lane.b32.xlu1 %v41_v7, %s284_s3  ;;  %v42_v12 = vcombine.high %v41_v7, %v41_v7  ;;  %v106_v13 = vsel %vm104_vm0, %v41_v7, 0.0  ;;  %v46_v16 = vsel %vm45_vm3, %v41_v7, 0.0  ;;  %v90_v20 = vsel %vm88_vm4, %v41_v7, 0.0  ;;  %s31_s7 = sadd.f32 %s336_s5, %s334_s1 }
  0x28   :  { %v108_v18 = vsel %vm45_vm3, %v106_v13, 0.0  ;;  %v92_v24 = vsel %vm45_vm3, %v90_v20, 0.0  ;;  %s171_s12 = sadd.f32 %s342_s8, %s338_s6 }
  0x29   :  { %v107_v14 = vsel %vm105_vm1, %v42_v12, 0.0  ;;  %v47_v17 = vsel %vm45_vm3, %v42_v12, 0.0  ;;  %v91_v21 = vsel %vm89_vm5, %v42_v12, 0.0  ;;  %s32_s9 = sadd.f32 %s338_s6, %s31_s7 }
  0x2a   :  { %v109_v19 = vsel %vm45_vm3, %v107_v14, 0.0  ;;  %v48_v22 = vadd.f32 %v47_v17, %v46_v16  ;;  %v93_v25 = vsel %vm45_vm3, %v91_v21, 0.0  ;;  %s174_s14 = sadd.f32 %s338_s6, %s334_s1 }
  0x2b   :  { %v110_v23 = vadd.f32 %v109_v19, %v108_v18  ;;  %v94_v26 = vadd.f32 %v93_v25, %v92_v24  ;;  %s33_s10 = sadd.f32 %s342_s8, %s32_s9 }
  0x2c   :  { %s177_s22 = sadd.f32 %s342_s8, %s336_s5 }
  0x43   :  { %60 = vadd.xlane.f32.xlu0 %v59_v15 }
  0x47   :  { %111 = vadd.xlane.f32.xlu0 %v110_v23 }
  0x4b   :  { %49 = vadd.xlane.f32.xlu1 %v48_v22 }
  0x4f   :  { %95 = vadd.xlane.f32.xlu1 %v94_v26 }
  0x53   :  { %122 = vadd.xlane.f32.xlu1 %v121_v27 }
  0x92   :  { %v70_v28 = vpop.permute.xlu0 %69 }
  0x93   :  { %v71_v29 = vrot.slane %v70_v28, 2 }
  0x95   :  { %v73_v31 = vsel %vm58_vm2, %v71_v29, 0.0  ;;  %v144_v32 = vsel %vm120_vm6, %v71_v29, 0.0 }
  0x96   :  { %74 = vadd.xlane.f32.xlu0 %v73_v31  ;;  %145 = vadd.xlane.f32.xlu1 %v144_v32  ;;  %v155_v33 = vpop.permute.xlu0 %154 }
  0x97   :  { %v156_v34 = vrot.slane %v155_v33, 2 }
  0x99   :  { %v132_v30 = vpop.permute.xlu1 %131  ;;  %v158_v36 = vsel %vm120_vm6, %v156_v34, 0.0 }
  0x9a   :  { %v134_v35 = vsel %vm120_vm6, %v132_v30, 0.0 }
  0x9b   :  { %135 = vadd.xlane.f32.xlu0 %v134_v35 }
  0x9f   :  { %159 = vadd.xlane.f32.xlu0 %v158_v36 }
  0xd0   :  { %v61_v37 = vpop.xlane.xlu0 %60 }
  0xd1   :  { %v62_v38 = vrot.slane %v61_v37, 4 }
  0xd3   :  { %v63_v39 = vadd.f32 %v62_v38, %v61_v37 }
  0xd4   :  { %v112_v52 = vpop.xlane.xlu0 %111 }
  0xd5   :  { %v64_v42 = vrot.slane %v63_v39, 2  ;;  %v113_v54 = vrot.slane %v112_v52, 4 }
  0xd7   :  { %v65_v44 = vadd.f32 %v64_v42, %v63_v39  ;;  %v114_v58 = vadd.f32 %v113_v54, %v112_v52 }
  0xd8   :  { %v50_v40 = vpop.xlane.xlu1 %49 }
  0xd9   :  { %v51_v41 = vrot.slane %v50_v40, 4  ;;  %v66_v46 = vrot.slane %v65_v44, 1  ;;  %v115_v63 = vrot.slane %v114_v58, 2 }
  0xdb   :  { %v52_v43 = vadd.f32 %v51_v41, %v50_v40  ;;  %v67_v49 = vadd.f32 %v66_v46, %v65_v44  ;;  %v116_v10 = vadd.f32 %v115_v63, %v114_v58 }
  0xdc   :  { %v96_v51 = vpop.xlane.xlu1 %95 }
  0xdd   :  { %v53_v45 = vrot.slane %v52_v43, 2  ;;  %v97_v53 = vrot.slane %v96_v51, 4  ;;  %v117_v20 = vrot.slane %v116_v10, 1 }
  0xdf   :  { %v54_v47 = vadd.f32 %v53_v45, %v52_v43  ;;  %v98_v57 = vadd.f32 %v97_v53, %v96_v51  ;;  %v118_v28 = vadd.f32 %v117_v20, %v116_v10 }
  0xe0   :  { %v123_v55 = vpop.xlane.xlu1 %122 }
  0xe1   :  { %v55_v48 = vrot.slane %v54_v47, 1  ;;  %v124_v56 = vrot.slane %v123_v55, 4  ;;  %v99_v60 = vrot.slane %v98_v57, 2 }
  0xe3   :  { %v56_v50 = vadd.f32 %v55_v48, %v54_v47  ;;  %v125_v59 = vadd.f32 %v124_v56, %v123_v55  ;;  %v100_v6 = vadd.f32 %v99_v60, %v98_v57 }
  0xe5   :  { %207 = vpush %v56_v50  ;;  %v126_v2 = vrot.slane %v125_v59, 2  ;;  %v101_v16 = vrot.slane %v100_v6, 1 }
  0xe6   :  { %209 = vpush %v67_v49 }
  0xe7   :  { %v127_v11 = vadd.f32 %v126_v2, %v125_v59  ;;  %v102_v25 = vadd.f32 %v101_v16, %v100_v6 }
  0xe9   :  { %v128_v21 = vrot.slane %v127_v11, 1 }
  0xeb   :  { %v129_v30 = vadd.f32 %v128_v21, %v127_v11 }
 0x116   :  { %s208_s11 = spop %207 }
 0x117   :  { %s210_s13 = spop %209  ;;  %s168_s15 = smul.f32 %s208_s11, %s33_s10 }
 0x118   :  { %s172_s20 = smul.f32 %s210_s13, %s171_s12 }
 0x123   :  { %v75_v61 = vpop.xlane.xlu0 %74  ;;  %v146_v62 = vpop.xlane.xlu1 %145 }
 0x124   :  { %v76_v0 = vrot.slane %v75_v61, 4  ;;  %v147_v1 = vrot.slane %v146_v62, 4 }
 0x126   :  { %v77_v3 = vadd.f32 %v76_v0, %v75_v61  ;;  %v148_v4 = vadd.f32 %v147_v1, %v146_v62 }
 0x128   :  { %v136_v5 = vpop.xlane.xlu0 %135  ;;  %v78_v7 = vrot.slane %v77_v3, 2  ;;  %v149_v8 = vrot.slane %v148_v4, 2 }
 0x129   :  { %v137_v9 = vrot.slane %v136_v5, 4 }
 0x12a   :  { %v79_v13 = vadd.f32 %v78_v7, %v77_v3  ;;  %v150_v14 = vadd.f32 %v149_v8, %v148_v4 }
 0x12b   :  { %v138_v12 = vadd.f32 %v137_v9, %v136_v5 }
 0x12c   :  { %v160_v15 = vpop.xlane.xlu0 %159  ;;  %v80_v19 = vrot.slane %v79_v13, 1  ;;  %v151_v26 = vrot.slane %v150_v14, 1 }
 0x12d   :  { %v139_v17 = vrot.slane %v138_v12, 2  ;;  %v161_v18 = vrot.slane %v160_v15, 4 }
 0x12e   :  { %v81_v23 = vadd.f32 %v80_v19, %v79_v13  ;;  %v152_v33 = vadd.f32 %v151_v26, %v150_v14 }
 0x12f   :  { %v162_v22 = vadd.f32 %v161_v18, %v160_v15  ;;  %v140_v24 = vadd.f32 %v139_v17, %v138_v12 }
 0x130   :  { %211 = vpush %v81_v23 }
 0x131   :  { %v163_v27 = vrot.slane %v162_v22, 2  ;;  %v141_v29 = vrot.slane %v140_v24, 1  ;;  %213 = vpush %v102_v25 }
 0x132   :  { %215 = vpush %v118_v28 }
 0x133   :  { %v164_v31 = vadd.f32 %v163_v27, %v162_v22  ;;  %v142_v32 = vadd.f32 %v141_v29, %v140_v24  ;;  %217 = vpush %v129_v30 }
 0x135   :  { %219 = vpush %v142_v32  ;;  %v165_v34 = vrot.slane %v164_v31, 1 }
 0x136   :  { %221 = vpush %v152_v33 }
 0x137   :  { %v166_v35 = vadd.f32 %v165_v34, %v164_v31 }
 0x139   :  { %223 = vpush %v166_v35 }
 0x161   :  { %s212_s16 = spop %211 }
 0x162   :  { %s169_s17 = smul.f32 %s212_s16, %s31_s7  ;;  %s214_s18 = spop %213 }
 0x163   :  { %s216_s19 = spop %215  ;;  %s178_s0 = smul.f32 %s214_s18, %s177_s22 }
 0x164   :  { %s170_s21 = ssub.f32 %s168_s15, %s169_s17  ;;  %s175_s23 = smul.f32 %s216_s19, %s174_s14 }
 0x165   :  { %s218_s25 = spop %217  ;;  %s264_s14 = scalar_lea.hbm %s370_s2, 16 }
 0x166   :  { %s173_s24 = ssub.f32 %s170_s21, %s172_s20  ;;  %s220_s26 = spop %219 }
 0x167   :  { %s222_s28 = spop %221  ;;  %s184_s9 = smul.f32 %s220_s26, %s338_s6 }
 0x168   :  { %s176_s27 = ssub.f32 %s173_s24, %s175_s23  ;;  %s182_s4 = smul.f32 %s222_s28, %s336_s5 }
 0x169   :  { %s186_s11 = smul.f32 %s218_s25, %s342_s8  ;;  %p265_p11 = scmp.ne.s32.totalorder %s370_s2, %s264_s14 }
 0x16a   :  { %s224_s29 = spop %223  ;;  %s179_s30 = ssub.f32 %s176_s27, %s178_s0 }
 0x16b   :  { %s180_s3 = smul.f32 %s224_s29, %s334_s1  ;;  %p268_p12 = scmp.lt.u32.totalorder %s264_s14, %s370_s2 }
 0x16d   :  { %s181_s7 = sadd.f32 %s180_s3, %s179_s30  ;;  %p270_p13 = pnand %p268_p12, %p265_p11 }
 0x16f   :  { %s183_s10 = sadd.f32 %s182_s4, %s181_s7 }
 0x171   :  { %s185_s16 = sadd.f32 %s184_s9, %s183_s10 }
 0x173   :  { %s187_s12 = sadd.f32 %s186_s11, %s185_s16 }
 0x175   :  { %189 = sst [smem:[#allocation7]] %s187_s12 }
 0x176   :  { %273 = shalt.err (!%p270_p13)
}
 0x177   :  { %s286_s1 = smov [#allocation7]  }
 0x178   :  { %197 = dma.smem_to_hbm %s286_s1, 16, %s370_s2, [#allocation6]  }
 0x179   :  { %278 = dma.done.wait [#allocation6], 16  }
 0x17a   :  { %279 = vsyncadd [#allocation6], 4294967280 }
 0x17b   :  { %201 = sfence }
 0x17c   :  { %202 = vsyncpa [#allocation5], 1 }
 0x17d   :  { %203 = vsyncpa [#allocation6], 1 }

</bundles_post_ra>
